<compile_context>
chip_gen: v7x
topology: tpu7x:2x2x1
jax: 0.10.0
libtpu: 0.0.40
codegen_flags: <defaults>
</compile_context>

<pallas_src>
import jax
import jax.numpy as jnp
from jax.experimental import pallas as pl
from jax.experimental.pallas import tpu as pltpu

D_IN = 128   # fc1 in_features (assumed; source omitted it)
H1 = 128     # fc1 out_features
H2 = 64      # fc2 out_features
H2P = 128    # H2 zero-padded to a full lane width
D_OUT = 1    # fc3 out_features


def _round_up(n, m):
    return ((n + m - 1) // m) * m


def mlp_kernel(x_ref, w1_ref, b1_ref, w2_ref, b2_ref, w3_ref, b3_ref, o_ref):
    # fc1: bf16 MXU matmul, f32 accumulate; bias + ReLU in f32 on the VPU.
    h1 = jnp.dot(x_ref[...], w1_ref[...], preferred_element_type=jnp.float32)
    h1 = jnp.maximum(h1 + b1_ref[...], 0.0)

    # fc2: bf16 MXU matmul (H2 padded to 128), f32 bias + ReLU.
    h2 = jnp.dot(h1.astype(jnp.bfloat16), w2_ref[...],
                 preferred_element_type=jnp.float32)
    h2 = jnp.maximum(h2 + b2_ref[...], 0.0)

    # fc3 (out_features == 1): rank-1 contraction on VPU + lane reduce instead
    # of an N=1 MXU matmul; padded columns of h2/w3 are zero so the sum is exact.
    logits = jnp.sum(h2 * w3_ref[...], axis=-1, keepdims=True) + b3_ref[0, 0]
    o_ref[...] = jax.nn.sigmoid(logits).astype(o_ref.dtype)


def neural_net1(x, w1, b1, w2, b2, w3, b3, *, block_rows=1024):
    """x: (B, 128) f32.  Weights stored (in, out), biases (1, out) — same math
    as the PyTorch module (x @ W.T + b with PyTorch's (out, in) storage).

    block_rows: batch tile. 1024 is a safe default on all generations; for very
    large B raise it (e.g. 4K-16K on v7x, 16K-32K on v6e with vmem_limit_bytes).
    """
    B = x.shape[0]
    assert x.shape[1] == D_IN

    # Batch tile: multiple of 8 sublanes, capped at block_rows.
    TB = min(block_rows, _round_up(B, 8))
    B_pad = _round_up(B, TB)

    # Stream x in bf16; zero-pad the batch tail (sliced off after the call).
    xb = x.astype(jnp.bfloat16)
    if B_pad != B:
        xb = jnp.pad(xb, ((0, B_pad - B), (0, 0)))

    # One-time weight prep: bf16 MXU operands, H2 padded 64 -> 128,
    # fc3 weights as a (1, 128) f32 row, b3 as an SMEM scalar.
    w1b = w1.astype(jnp.bfloat16)                                    # (128, 128)
    w2b = jnp.pad(w2, ((0, 0), (0, H2P - H2))).astype(jnp.bfloat16)  # (128, 128)
    b1f = b1.astype(jnp.float32)                                     # (1, 128)
    b2p = jnp.pad(b2.astype(jnp.float32), ((0, 0), (0, H2P - H2)))   # (1, 128)
    w3r = jnp.pad(w3.astype(jnp.float32).reshape(1, H2),
                  ((0, 0), (0, H2P - H2)))                           # (1, 128)
    b3s = b3.astype(jnp.float32).reshape(1, 1)                       # (1, 1) SMEM

    grid = (B_pad // TB,)
    out = pl.pallas_call(
        mlp_kernel,
        out_shape=jax.ShapeDtypeStruct((B_pad, D_OUT), jnp.float32),
        grid=grid,
        in_specs=[
            pl.BlockSpec((TB, D_IN), lambda i: (i, 0)),          # x: streamed
            pl.BlockSpec((D_IN, H1), lambda i: (0, 0)),          # w1: resident
            pl.BlockSpec((1, H1), lambda i: (0, 0)),             # b1: resident
            pl.BlockSpec((H1, H2P), lambda i: (0, 0)),           # w2: resident
            pl.BlockSpec((1, H2P), lambda i: (0, 0)),            # b2: resident
            pl.BlockSpec((1, H2P), lambda i: (0, 0)),            # w3 row: resident
            pl.BlockSpec(memory_space=pltpu.MemorySpace.SMEM),   # b3 scalar
        ],
        out_specs=pl.BlockSpec((TB, D_OUT), lambda i: (i, 0)),
        compiler_params=pltpu.CompilerParams(
            dimension_semantics=("parallel",)),
    )(xb, w1b, b1f, w2b, b2p, w3r, b3s)

    return out[:B]


def init_linear(key, fan_in, fan_out, dtype=jnp.float32):
    # PyTorch nn.Linear default init: U(-1/sqrt(fan_in), 1/sqrt(fan_in))
    kw, kb = jax.random.split(key)
    bound = 1.0 / (fan_in ** 0.5)
    w = jax.random.uniform(kw, (fan_in, fan_out), dtype, minval=-bound, maxval=bound)
    b = jax.random.uniform(kb, (1, fan_out), dtype, minval=-bound, maxval=bound)
    return w, b


if __name__ == "__main__":
    key = jax.random.PRNGKey(0)
    kx, k1, k2, k3 = jax.random.split(key, 4)

    B = 8
    x = jax.random.normal(kx, (B, D_IN), jnp.float32)

    w1, b1 = init_linear(k1, D_IN, H1)
    w2, b2 = init_linear(k2, H1, H2)
    w3, b3 = init_linear(k3, H2, D_OUT)

    out = neural_net1(x, w1, b1, w2, b2, w3, b3)
    out = jax.block_until_ready(out)

    # Plain-JAX f32 reference (kernel uses bf16 MXU operands -> loose tolerance).
    ref = jax.nn.sigmoid(
        jnp.maximum(jnp.maximum(x @ w1 + b1, 0.0) @ w2 + b2, 0.0) @ w3 + b3
    )
    assert out.shape == (B, D_OUT)
    assert jnp.allclose(out, ref, atol=2e-2, rtol=2e-2), float(jnp.max(jnp.abs(out - ref)))

    print("KERNEL_OK")
</pallas_src>

<mosaic_0001>
module attributes {stable_mosaic.version = 11 : i64} {
  func.func @mlp_kernel(%arg0: i32, %arg1: memref<8x128xbf16, #tpu.memory_space<vmem>>, %arg2: memref<128x128xbf16, #tpu.memory_space<vmem>>, %arg3: memref<1x128xf32, #tpu.memory_space<vmem>>, %arg4: memref<128x128xbf16, #tpu.memory_space<vmem>>, %arg5: memref<1x128xf32, #tpu.memory_space<vmem>>, %arg6: memref<1x128xf32, #tpu.memory_space<vmem>>, %arg7: memref<1x1xf32, #tpu.memory_space<smem>>, %arg8: memref<8x1xf32, #tpu.memory_space<vmem>>) attributes {dimension_semantics = [#tpu.dimension_semantics<parallel>], iteration_bounds = array<i64: 1>, scalar_prefetch = 0 : i64, scratch_operands = 0 : i64, tpu.core_type = #tpu.core_type<tc>, window_params = [{transform_indices = @transform_0, window_bounds = array<i64: 8, 128>}, {pipeline_mode = #tpu.pipeline_mode<synchronous>, transform_indices = @transform_1, window_bounds = array<i64: 128, 128>}, {pipeline_mode = #tpu.pipeline_mode<synchronous>, transform_indices = @transform_2, window_bounds = array<i64: 1, 128>}, {pipeline_mode = #tpu.pipeline_mode<synchronous>, transform_indices = @transform_3, window_bounds = array<i64: 128, 128>}, {pipeline_mode = #tpu.pipeline_mode<synchronous>, transform_indices = @transform_4, window_bounds = array<i64: 1, 128>}, {pipeline_mode = #tpu.pipeline_mode<synchronous>, transform_indices = @transform_5, window_bounds = array<i64: 1, 128>}, {transform_indices = @transform_6, window_bounds = array<i64: 1, 1>}, {transform_indices = @transform_7, window_bounds = array<i64: 8, 1>}]} {
    %c0 = arith.constant 0 : index
    %c0_0 = arith.constant 0 : index
    %0 = vector.load %arg1[%c0, %c0_0] : memref<8x128xbf16, #tpu.memory_space<vmem>>, vector<8x128xbf16>
    %c0_1 = arith.constant 0 : index
    %c0_2 = arith.constant 0 : index
    %1 = vector.load %arg2[%c0_1, %c0_2] : memref<128x128xbf16, #tpu.memory_space<vmem>>, vector<128x128xbf16>
    %cst = arith.constant dense<0.000000e+00> : vector<8x128xf32>
    %2 = tpu.matmul %0, %1, %cst {dimension_numbers = #tpu.dot_dimension_numbers<[1], [0], [0], [1], [0, 0, 1, 1], [], []>} : vector<8x128xbf16>, vector<128x128xbf16>, vector<8x128xf32> -> vector<8x128xf32>
    %c0_3 = arith.constant 0 : index
    %c0_4 = arith.constant 0 : index
    %3 = vector.load %arg3[%c0_3, %c0_4] : memref<1x128xf32, #tpu.memory_space<vmem>>, vector<1x128xf32>
    %4 = vector.broadcast %3 : vector<1x128xf32> to vector<8x128xf32>
    %5 = arith.addf %2, %4 : vector<8x128xf32>
    %cst_5 = arith.constant 0.000000e+00 : f32
    %6 = vector.broadcast %cst_5 : f32 to vector<8x128xf32>
    %7 = arith.maximumf %5, %6 : vector<8x128xf32>
    %8 = arith.truncf %7 : vector<8x128xf32> to vector<8x128xbf16>
    %c0_6 = arith.constant 0 : index
    %c0_7 = arith.constant 0 : index
    %9 = vector.load %arg4[%c0_6, %c0_7] : memref<128x128xbf16, #tpu.memory_space<vmem>>, vector<128x128xbf16>
    %cst_8 = arith.constant dense<0.000000e+00> : vector<8x128xf32>
    %10 = tpu.matmul %8, %9, %cst_8 {dimension_numbers = #tpu.dot_dimension_numbers<[1], [0], [0], [1], [0, 0, 1, 1], [], []>} : vector<8x128xbf16>, vector<128x128xbf16>, vector<8x128xf32> -> vector<8x128xf32>
    %c0_9 = arith.constant 0 : index
    %c0_10 = arith.constant 0 : index
    %11 = vector.load %arg5[%c0_9, %c0_10] : memref<1x128xf32, #tpu.memory_space<vmem>>, vector<1x128xf32>
    %12 = vector.broadcast %11 : vector<1x128xf32> to vector<8x128xf32>
    %13 = arith.addf %10, %12 : vector<8x128xf32>
    %cst_11 = arith.constant 0.000000e+00 : f32
    %14 = vector.broadcast %cst_11 : f32 to vector<8x128xf32>
    %15 = arith.maximumf %13, %14 : vector<8x128xf32>
    %c0_12 = arith.constant 0 : index
    %c0_13 = arith.constant 0 : index
    %16 = vector.load %arg6[%c0_12, %c0_13] : memref<1x128xf32, #tpu.memory_space<vmem>>, vector<1x128xf32>
    %17 = vector.broadcast %16 : vector<1x128xf32> to vector<8x128xf32>
    %18 = arith.mulf %15, %17 : vector<8x128xf32>
    %cst_14 = arith.constant dense<0.000000e+00> : vector<8xf32>
    %19 = vector.multi_reduction <add>, %18, %cst_14 [1] : vector<8x128xf32> to vector<8xf32>
    %20 = vector.shape_cast %19 : vector<8xf32> to vector<8x1xf32>
    %c0_15 = arith.constant 0 : index
    %c0_16 = arith.constant 0 : index
    %21 = memref.load %arg7[%c0_15, %c0_16] : memref<1x1xf32, #tpu.memory_space<smem>>
    %22 = vector.broadcast %21 : f32 to vector<8x1xf32>
    %23 = arith.addf %20, %22 : vector<8x1xf32>
    %24 = arith.negf %23 : vector<8x1xf32>
    %25 = math.exp %24 : vector<8x1xf32>
    %cst_17 = arith.constant 1.000000e+00 : f32
    %26 = vector.broadcast %cst_17 : f32 to vector<8x1xf32>
    %27 = arith.addf %26, %25 : vector<8x1xf32>
    %28 = arith.divf %26, %27 : vector<8x1xf32>
    %c0_18 = arith.constant 0 : index
    %c0_19 = arith.constant 0 : index
    %29 = vector.load %arg8[%c0_18, %c0_19] : memref<8x1xf32, #tpu.memory_space<vmem>>, vector<8x1xf32>
    tpu.vector_store %arg8[%c0_18, %c0_19], %28 {strides = array<i32>} : memref<8x1xf32, #tpu.memory_space<vmem>>, vector<8x1xf32>,
    return
  }
  func.func @transform_0(%arg0: i32) -> (i32, i32) {
    %c0_i32 = arith.constant 0 : i32
    %c0_i32_0 = arith.constant 0 : i32
    return %arg0, %c0_i32 : i32, i32
  }
  func.func @transform_1(%arg0: i32) -> (i32, i32) {
    %c0_i32 = arith.constant 0 : i32
    %c0_i32_0 = arith.constant 0 : i32
    %c0_i32_1 = arith.constant 0 : i32
    return %c0_i32, %c0_i32_0 : i32, i32
  }
  func.func @transform_2(%arg0: i32) -> (i32, i32) {
    %c0_i32 = arith.constant 0 : i32
    %c0_i32_0 = arith.constant 0 : i32
    %c0_i32_1 = arith.constant 0 : i32
    return %c0_i32, %c0_i32_0 : i32, i32
  }
  func.func @transform_3(%arg0: i32) -> (i32, i32) {
    %c0_i32 = arith.constant 0 : i32
    %c0_i32_0 = arith.constant 0 : i32
    %c0_i32_1 = arith.constant 0 : i32
    return %c0_i32, %c0_i32_0 : i32, i32
  }
  func.func @transform_4(%arg0: i32) -> (i32, i32) {
    %c0_i32 = arith.constant 0 : i32
    %c0_i32_0 = arith.constant 0 : i32
    %c0_i32_1 = arith.constant 0 : i32
    return %c0_i32, %c0_i32_0 : i32, i32
  }
  func.func @transform_5(%arg0: i32) -> (i32, i32) {
    %c0_i32 = arith.constant 0 : i32
    %c0_i32_0 = arith.constant 0 : i32
    %c0_i32_1 = arith.constant 0 : i32
    return %c0_i32, %c0_i32_0 : i32, i32
  }
  func.func @transform_6(%arg0: i32) -> (i32, i32) {
    %c0_i32 = arith.constant 0 : i32
    %c0_i32_0 = arith.constant 0 : i32
    %c0_i32_1 = arith.constant 0 : i32
    return %c0_i32, %c0_i32_0 : i32, i32
  }
  func.func @transform_7(%arg0: i32) -> (i32, i32) {
    %c0_i32 = arith.constant 0 : i32
    %c0_i32_0 = arith.constant 0 : i32
    return %arg0, %c0_i32 : i32, i32
  }
}

</mosaic_0001>

<bundles_post_ra>
// kernel: tpu_custom_call.1
= control target key start
LH: loop header
LB: loop body
LE: loop exit
PB: predicated region body
PF: predicated region fallthrough
CT: control target
= control target key end

     0   :  { %13 = vsyncpa [#allocation4], 0  ;;  %s599_s0 = inlined_call_operand.hbm [shape: bf16[8,128], index: 0, kind: input, shape index: {}]   ;;  %s600_s1 = inlined_call_operand.hbm [shape: bf16[128,128], index: 1, kind: input, shape index: {}]   ;;  %s601_s2 = inlined_call_operand.vmem [shape: f32[1,128], index: 2, kind: input, shape index: {}]   ;;  %s602_s3 = inlined_call_operand.hbm [shape: bf16[128,128], index: 3, kind: input, shape index: {}]   ;;  %s603_s4 = inlined_call_operand.vmem [shape: f32[1,128], index: 4, kind: input, shape index: {}]   ;;  %s604_s5 = inlined_call_operand.vmem [shape: f32[1,128], index: 5, kind: input, shape index: {}]   ;;  %s605_s6 = inlined_call_operand.<no memory space> [shape: f32[1,1], index: 6, kind: input, shape index: {}]   ;;  %s606_s7 = inlined_call_operand.vmem [shape: f32[8,1], index: 7, kind: output, shape index: {}]  }
   0x1   :  { %14 = vsyncpa [#allocation6], 0  ;;  %s495_s24 = smov [#allocation5]   ;;  %s425_s28 = scalar_lea.hbm %s600_s1, 1024 }
   0x2   :  { %s30_s25 = sshll.u32 %s495_s24, 4  ;;  %p426_p0 = scmp.ne.s32.totalorder %s600_s1, %s425_s28  ;;  %s31_s25 = int_to_ptr.vmem [resolvable:$true] %s30_s25 }
   0x3   :  { %p429_p1 = scmp.lt.u32.totalorder %s425_s28, %s600_s1 }
   0x5   :  { %p431_p2 = pnand %p429_p1, %p426_p0 }
   0x7   :  { %434 = shalt.err (!%p431_p2)
}
   0x8   :  { %s435_s10 = scalar_lea.vmem %s31_s25, 1024  ;;  %p440_p4 = scmp.lt.s32.totalorder %s31_s25, %s31_s25 }
   0x9   :  { %p436_p3 = scmp.ne.s32.totalorder %s31_s25, %s435_s10  ;;  %p441_p5 = scmp.lt.s32.totalorder %s435_s10, %s435_s10 }
   0xb   :  { %p442_p6 = por %p441_p5, %p440_p4 }
   0xd   :  { %p443_p7 = pnand %p442_p6, %p436_p3 }
   0xf   :  { %446 = shalt.err (!%p443_p7)
}
  0x10   :  { %s496_s11 = smov 64   ;;  %s497_s12 = smov 4  }
  0x11   :  { %36 = dma.hbm_to_vmem [thread:$0]  %s600_s1, 1024, %s31_s25, [#allocation6], %s496_s11, %s496_s11, %s497_s12  }
  0x12   :  { %s498_s15 = smov [#allocation3]   ;;  %s499_s17 = smov [#allocation7]  }
  0x13   :  { %s21_s16 = sshll.u32 %s498_s15, 4  ;;  %s44_s18 = sshll.u32 %s499_s17, 4  ;;  %s22_s16 = int_to_ptr.vmem [resolvable:$true] %s21_s16  ;;  %s45_s18 = int_to_ptr.vmem [resolvable:$true] %s44_s18 }
  0x14   :  { %s447_s21 = scalar_lea.hbm %s599_s0, 64 }
  0x15   :  { %p448_p8 = scmp.ne.s32.totalorder %s599_s0, %s447_s21  ;;  %p451_p9 = scmp.lt.u32.totalorder %s447_s21, %s599_s0 }
  0x17   :  { %p453_p10 = pnand %p451_p9, %p448_p8 }
  0x19   :  { %456 = shalt.err (!%p453_p10)
}
  0x1a   :  { %s457_s1 = scalar_lea.vmem %s22_s16, 64  ;;  %p462_p12 = scmp.lt.s32.totalorder %s22_s16, %s22_s16 }
  0x1b   :  { %p458_p11 = scmp.ne.s32.totalorder %s22_s16, %s457_s1  ;;  %p463_p13 = scmp.lt.s32.totalorder %s457_s1, %s457_s1 }
  0x1d   :  { %p464_p0 = por %p463_p13, %p462_p12 }
  0x1f   :  { %p465_p1 = pnand %p464_p0, %p458_p11 }
  0x21   :  { %468 = shalt.err (!%p465_p1)
}
  0x22   :  { %24 = dma.hbm_to_vmem [thread:$0]  %s599_s0, 64, %s22_s16, [#allocation4]  }
  0x23   :  { %s469_s30 = scalar_lea.hbm %s602_s3, 1024 }
  0x24   :  { %p470_p2 = scmp.ne.s32.totalorder %s602_s3, %s469_s30  ;;  %p473_p3 = scmp.lt.u32.totalorder %s469_s30, %s602_s3 }
  0x26   :  { %p475_p4 = pnand %p473_p3, %p470_p2 }
  0x28   :  { %478 = shalt.err (!%p475_p4)
}
  0x29   :  { %s479_s14 = scalar_lea.vmem %s45_s18, 1024  ;;  %p484_p6 = scmp.lt.s32.totalorder %s45_s18, %s45_s18 }
  0x2a   :  { %p480_p5 = scmp.ne.s32.totalorder %s45_s18, %s479_s14  ;;  %p485_p7 = scmp.lt.s32.totalorder %s479_s14, %s479_s14 }
  0x2c   :  { %p486_p8 = por %p485_p7, %p484_p6 }
  0x2e   :  { %p487_p9 = pnand %p486_p8, %p480_p5 }
  0x30   :  { %490 = shalt.err (!%p487_p9)
}
  0x31   :  { %50 = dma.hbm_to_vmem [thread:$0]  %s602_s3, 1024, %s45_s18, [#allocation6], %s496_s11, %s496_s11, %s497_s12  }
  0x32   :  { %491 = dma.done.wait [#allocation4], 64  }
  0x33   :  { %492 = vsyncadd [#allocation4], 4294967232 }
  0x34   :  { %493 = dma.done.wait [#allocation6], 2048  }
  0x35   :  { %494 = vsyncadd [#allocation6], 4294965248  ;;  %v500_v0 = vmov 0.0   ;;  %vm501_vm0 = vmmov 0   ;;  %v405_v1 = vld [vmem:[#allocation5] sm:$0xff]   ;;  %v406_v2 = vld [vmem:[#allocation5 + $0x8] sm:$0xff]   ;;  %v304_v35 = vstv %s605_s6 }
  0x36   :  { %358 = vmatprep.subr.bf16.mxu0 %v500_v0  ;;  %374 = vmatprep.mubr.msk.bf16.mxu0 %vm501_vm0, %v500_v0  ;;  %v407_v3 = vld [vmem:[#allocation5 + $0x10] sm:$0xff]   ;;  %v413_v4 = vld [vmem:[#allocation7] sm:$0xff]   ;;  %v408_v5 = vld [vmem:[#allocation5 + $0x18] sm:$0xff]   ;;  %vm312_vm1 = vcmask 7168  }
  0x37   :  { %378 = vmatprep.subr.bf16.mxu1 %v500_v0  ;;  %394 = vmatprep.mubr.msk.bf16.mxu1 %vm501_vm0, %v500_v0  ;;  %v414_v6 = vld [vmem:[#allocation7 + $0x8] sm:$0xff]   ;;  %v409_v7 = vld [vmem:[#allocation5 + $0x20] sm:$0xff]   ;;  %v415_v8 = vld [vmem:[#allocation7 + $0x10] sm:$0xff]  }
  0x38   :  { %359 = vmatpush3.bf16.msra.mxu0 %v405_v1  ;;  %379 = vmatpush3.bf16.msra.mxu1 %v413_v4  ;;  %v410_v9 = vld [vmem:[#allocation5 + $0x28] sm:$0xff]   ;;  %v416_v10 = vld [vmem:[#allocation7 + $0x18] sm:$0xff]   ;;  %v411_v11 = vld [vmem:[#allocation5 + $0x30] sm:$0xff]  }
  0x39   :  { %360 = vmatprep.subr.bf16.mxu0 %v500_v0  ;;  %380 = vmatprep.subr.bf16.mxu1 %v500_v0  ;;  %v417_v12 = vld [vmem:[#allocation7 + $0x20] sm:$0xff]   ;;  %v412_v13 = vld [vmem:[#allocation5 + $0x38] sm:$0xff]   ;;  %v418_v14 = vld [vmem:[#allocation7 + $0x28] sm:$0xff]  }
  0x3a   :  { %v67_v15 = vld [vmem:[#allocation3] sm:$0xf]  ;;  %v419_v16 = vld [vmem:[#allocation7 + $0x30] sm:$0xff]  }
  0x3b   :  { %v420_v17 = vld [vmem:[#allocation7 + $0x38] sm:$0xff]  }
  0x3c   :  { %361 = vmatpush3.bf16.msra.mxu0 %v406_v2  ;;  %381 = vmatpush3.bf16.msra.mxu1 %v414_v6  ;;  %v320_v18 = vld [vmem:[%s601_s2] ss:$0 sm:$0xff] }
  0x3d   :  { %362 = vmatprep.subr.bf16.mxu0 %v500_v0  ;;  %382 = vmatprep.subr.bf16.mxu1 %v500_v0  ;;  %v329_v26 = vld [vmem:[%s603_s4] ss:$0 sm:$0xff] }
  0x3e   :  { %v338_v31 = vld [vmem:[%s604_s5] ss:$0 sm:$0xff] }
  0x40   :  { %363 = vmatpush3.bf16.msra.mxu0 %v407_v3  ;;  %383 = vmatpush3.bf16.msra.mxu1 %v415_v8 }
  0x41   :  { %364 = vmatprep.subr.bf16.mxu0 %v500_v0  ;;  %384 = vmatprep.subr.bf16.mxu1 %v500_v0 }
  0x44   :  { %365 = vmatpush3.bf16.msra.mxu0 %v408_v5  ;;  %385 = vmatpush3.bf16.msra.mxu1 %v416_v10 }
  0x45   :  { %366 = vmatprep.subr.bf16.mxu0 %v500_v0  ;;  %386 = vmatprep.subr.bf16.mxu1 %v500_v0 }
  0x48   :  { %367 = vmatpush3.bf16.msra.mxu0 %v409_v7  ;;  %387 = vmatpush3.bf16.msra.mxu1 %v417_v12 }
  0x49   :  { %368 = vmatprep.subr.bf16.mxu0 %v500_v0  ;;  %388 = vmatprep.subr.bf16.mxu1 %v500_v0 }
  0x4c   :  { %369 = vmatpush3.bf16.msra.mxu0 %v410_v9  ;;  %389 = vmatpush3.bf16.msra.mxu1 %v418_v14 }
  0x4d   :  { %370 = vmatprep.subr.bf16.mxu0 %v500_v0  ;;  %390 = vmatprep.subr.bf16.mxu1 %v500_v0 }
  0x50   :  { %371 = vmatpush3.bf16.msra.mxu0 %v411_v11  ;;  %391 = vmatpush3.bf16.msra.mxu1 %v419_v16 }
  0x51   :  { %372 = vmatprep.subr.bf16.mxu0 %v500_v0  ;;  %392 = vmatprep.subr.bf16.mxu1 %v500_v0 }
  0x54   :  { %373 = vmatpush3.bf16.msra.mxu0 %v412_v13  ;;  %393 = vmatpush3.bf16.msra.mxu1 %v420_v17 }
  0x57   :  { %375 = vmatmul.mubr.bf16.vlgmr.msra.gmra.mrb[0].mxu0 %v67_v15 }
 0x12a   :  { %v173_v19 = vpop.f32.mrb[0].mxu0 }
 0x12b   :  { %v174_v20 = vadd.f32 %v320_v18, %v173_v19  ;;  %v376_v21 = vpop.f32.mrb[1].mxu0 }
 0x12c   :  { %v176_v22 = vpop.f32.mrb[2].mxu0 }
 0x12d   :  { %v179_v23 = vmax.f32 %v174_v20, 0.0  ;;  %v377_v24 = vpop.f32.mrb[3].mxu0 }
 0x12f   :  { %v180_v25 = vpack.c.bf16 %v179_v23, %v179_v23 }
 0x131   :  { %395 = vmatmul.mubr.bf16.vlgmr.msra.gmra.mrb[0].mxu1 %v180_v25 }
 0x204   :  { %v286_v27 = vpop.f32.mrb[0].mxu1 }
 0x205   :  { %v287_v28 = vadd.f32 %v329_v26, %v286_v27  ;;  %v396_v29 = vpop.f32.mrb[1].mxu1 }
 0x206   :  { %v289_v30 = vpop.f32.mrb[2].mxu1 }
 0x207   :  { %v292_v32 = vmax.f32 %v287_v28, 0.0  ;;  %v397_v33 = vpop.f32.mrb[3].mxu1 }
 0x209   :  { %v300_v34 = vmul.f32 %v338_v31, %v292_v32 }
 0x20b   :  { %301 = vadd.xlane.f32.xlu0 %v300_v34 }
 0x298   :  { %v302_v36 = vpop.xlane.xlu0 %301 }
 0x299   :  { %v305_v37 = vadd.f32 %v304_v35, %v302_v36 }
 0x29b   :  { %v339_v38 = vmul.f32 -1.442695, %v305_v37 }
 0x29d   :  { %421 = vpow2.f32 %v339_v38 }
 0x2a7   :  { %v422_v39 = vpop.eup %421 }
 0x2a8   :  { %v309_v40 = vadd.f32 1.0, %v422_v39 }
 0x2aa   :  { %423 = vrcp.f32 %v309_v40 }
 0x2b4   :  { %v424_v41 = vpop.eup %423 }
 0x2b5   :  { %313 = vst.msk [vmem:[%s606_s7] sm:$0xff] %vm312_vm1, %v424_v41 }
 0x2b6   :  { %318 = vsyncpa [#allocation4], 1 }
 0x2b7   :  { %319 = vsyncpa [#allocation6], 1 }

</bundles_post_ra>
